<compile_context>
chip_gen: v7x
topology: tpu7x:2x2x1
jax: 0.10.0
libtpu: 0.0.40
codegen_flags: <defaults>
</compile_context>

<pallas_src>
import functools
import math

import jax
import jax.numpy as jnp
from jax.experimental import pallas as pl
from jax.experimental.pallas import tpu as pltpu

# clip(p, 1e-12, 1.0) on probabilities  <=>  clip(-log p, 0, -log(1e-12)) on losses
_MAX_LOSS = -math.log(1e-12)


def _ce_kernel(logits_ref, target_ref, wk_ref, out_ref):
    """One (batch b, pixel-tile j) step.

    logits_ref : (1, C, TPX)  input dtype (f32 or bf16); classes on sublanes, pixels on lanes
    target_ref : (1, 1, TPX)  int32
    wk_ref     : (1, 1, TPX)  f32 = class_weight[target] * keep_mask  (0 for ignored/padded px)
    out_ref    : (1, 1, TPX)  f32 per-batch, per-lane partial loss sums (accumulated over j)
    """
    j = pl.program_id(1)

    @pl.when(j == 0)
    def _init():
        out_ref[...] = jnp.zeros_like(out_ref)

    x = logits_ref[...].astype(jnp.float32)                         # (1, C, TPX)

    # numerically stable logsumexp over the class (sublane) axis
    m = jnp.max(x, axis=1, keepdims=True)                           # (1, 1, TPX)
    lse = m + jnp.log(jnp.sum(jnp.exp(x - m), axis=1, keepdims=True))

    # gather the target-class logit via one-hot masked sublane reduction
    tgt = target_ref[...]                                           # (1, 1, TPX) int32
    cls = jax.lax.broadcasted_iota(jnp.int32, x.shape, 1)           # (1, C, TPX)
    x_t = jnp.sum(jnp.where(cls == tgt, x, 0.0), axis=1, keepdims=True)

    # -log(clip(softmax(x)[t], 1e-12, 1.0)) == clip(lse - x_t, 0, -log(1e-12))
    loss = jnp.clip(lse - x_t, 0.0, _MAX_LOSS)                      # (1, 1, TPX)

    out_ref[...] += loss * wk_ref[...]


def _pick_tile_px(hw, c, itemsize, *, max_tile=2048, block_budget_bytes=4 << 20):
    """Largest multiple-of-128 pixel tile within a per-block VMEM budget; prefers exact divisors of hw."""
    cap = (block_budget_bytes // max(1, c * itemsize)) // 128 * 128
    cap = max(128, min(max_tile, cap))
    cap = max(128, min(cap, ((hw + 127) // 128) * 128))
    for t in range(cap, 127, -128):
        if hw % t == 0:
            return t            # no pixel-axis padding needed
    return cap                  # fall back: pad pixel axis up to a multiple of cap


@functools.partial(jax.jit, static_argnames=("tile_px",))
def cross_entropy_pallas(logits_nchw, target, mask_keep, class_weights=None, *, tile_px=None):
    """logits_nchw: [B,C,H,W] float (f32 or bf16); target: [B,H,W] int; mask_keep: [B,H,W] bool;
    class_weights: [C] float or None (None == module's weights=None). Returns scalar f32."""
    B, C, H, W = logits_nchw.shape
    HW = H * W

    if tile_px is None:
        tile_px = _pick_tile_px(HW, C, jnp.dtype(logits_nchw.dtype).itemsize)

    # NCHW -> [B, C, HW]: a pure reshape (no transpose, no extra HBM round-trip, no dtype upcast)
    x = logits_nchw.reshape(B, C, HW)

    keep = mask_keep.reshape(B, 1, HW)
    # module mutates target[mask_keep == False] = 0; mirror functionally (also makes gathers safe)
    tgt = jnp.where(keep, target.reshape(B, 1, HW).astype(jnp.int32), 0)

    # hoisted per-pixel weight * keep (lane-dense); kernel never touches the class-weight vector
    if class_weights is None:
        wk = keep.astype(jnp.float32)
    else:
        w = jnp.asarray(class_weights, jnp.float32)
        wk = jnp.where(keep, jnp.take(w, tgt, axis=0), 0.0)

    # exact kept-pixel count (int accumulation; avoids f32 precision loss past 2^24 pixels)
    n_keep = jnp.sum(mask_keep.astype(jnp.int32)).astype(jnp.float32)

    # pad the pixel axis only if tile_px does not divide HW (usually a no-op);
    # padded pixels get wk == 0 -> zero contribution, zero logits -> finite math
    HW_pad = pl.cdiv(HW, tile_px) * tile_px
    pad = HW_pad - HW
    if pad:
        x = jnp.pad(x, ((0, 0), (0, 0), (0, pad)))
        tgt = jnp.pad(tgt, ((0, 0), (0, 0), (0, pad)))
        wk = jnp.pad(wk, ((0, 0), (0, 0), (0, pad)))

    nj = HW_pad // tile_px
    partials = pl.pallas_call(
        _ce_kernel,
        out_shape=jax.ShapeDtypeStruct((B, 1, tile_px), jnp.float32),
        grid_spec=pltpu.PrefetchScalarGridSpec(
            num_scalar_prefetch=0,
            grid=(B, nj),
            in_specs=[
                pl.BlockSpec((1, C, tile_px), lambda b, j: (b, 0, j)),   # logits tile (class-major)
                pl.BlockSpec((1, 1, tile_px), lambda b, j: (b, 0, j)),   # target (lane-dense)
                pl.BlockSpec((1, 1, tile_px), lambda b, j: (b, 0, j)),   # weight*keep (lane-dense)
            ],
            out_specs=pl.BlockSpec((1, 1, tile_px), lambda b, j: (b, 0, 0)),  # per-batch accumulator
        ),
        compiler_params=pltpu.CompilerParams(
            dimension_semantics=("parallel", "arbitrary"),   # batch axis can split across TCs (v7x)
            vmem_limit_bytes=32 * 1024 * 1024,
        ),
    )(x, tgt, wk)

    # TODO(synk): like the PyTorch module, division by sum(mask_keep) yields NaN if nothing is kept.
    return jnp.sum(partials) / n_keep


def cross_entropy_ref(logits_nchw, target, mask_keep, class_weights):
    """Pure-JAX reference mirroring the PyTorch module."""
    B, C, H, W = logits_nchw.shape
    probs = jax.nn.softmax(logits_nchw.astype(jnp.float32), axis=1)
    tgt = jnp.where(mask_keep, target, 0)
    onehot = jax.nn.one_hot(tgt, C, axis=1, dtype=jnp.float32)        # [B,C,H,W]
    keep = mask_keep.astype(jnp.float32)
    p_t = jnp.clip(jnp.sum(probs * onehot, axis=1), 1e-12, 1.0)       # [B,H,W]
    losses = -jnp.log(p_t) * jnp.asarray(class_weights, jnp.float32)[tgt]
    return jnp.sum(losses * keep) / jnp.sum(keep)


if __name__ == "__main__":
    B, C, H, W = 2, 4, 16, 16
    key = jax.random.PRNGKey(0)
    k1, k2, k3 = jax.random.split(key, 3)

    logits = jax.random.normal(k1, (B, C, H, W), dtype=jnp.float32)
    target = jax.random.randint(k2, (B, H, W), 0, C, dtype=jnp.int32)
    mask_keep = jax.random.bernoulli(k3, 0.8, (B, H, W))
    class_weights = jnp.array([0.5, 1.0, 1.5, 2.0], dtype=jnp.float32)

    out = cross_entropy_pallas(logits, target, mask_keep, class_weights)
    out = jax.block_until_ready(out)

    ref = cross_entropy_ref(logits, target, mask_keep, class_weights)
    assert jnp.allclose(out, ref, rtol=1e-5, atol=1e-5), (out, ref)

    print("KERNEL_OK")
</pallas_src>

<mosaic_0001>
module attributes {stable_mosaic.version = 11 : i64} {
  func.func @_ce_kernel(%arg0: i32, %arg1: i32, %arg2: memref<1x4x256xf32, #tpu.memory_space<vmem>>, %arg3: memref<1x1x256xi32, #tpu.memory_space<vmem>>, %arg4: memref<1x1x256xf32, #tpu.memory_space<vmem>>, %arg5: memref<1x1x256xf32, #tpu.memory_space<vmem>>) attributes {dimension_semantics = [#tpu.dimension_semantics<parallel>, #tpu.dimension_semantics<arbitrary>], iteration_bounds = array<i64: 2, 1>, scalar_prefetch = 0 : i64, scratch_operands = 0 : i64, tpu.core_type = #tpu.core_type<tc>, window_params = [{transform_indices = @transform_0, window_bounds = array<i64: 1, 4, 256>}, {transform_indices = @transform_1, window_bounds = array<i64: 1, 1, 256>}, {transform_indices = @transform_2, window_bounds = array<i64: 1, 1, 256>}, {transform_indices = @transform_3, window_bounds = array<i64: 1, 1, 256>}]} {
    %c0_i32 = arith.constant 0 : i32
    %0 = arith.cmpi eq, %arg1, %c0_i32 : i32
    %1 = arith.extui %0 : i1 to i32
    %c0_i32_0 = arith.constant 0 : i32
    %2 = arith.cmpi ne, %1, %c0_i32_0 : i32
    scf.if %2 {
      %cst_20 = arith.constant 0.000000e+00 : f32
      %31 = vector.broadcast %cst_20 : f32 to vector<1x1x256xf32>
      %c0_21 = arith.constant 0 : index
      %c0_22 = arith.constant 0 : index
      %c0_23 = arith.constant 0 : index
      %32 = vector.load %arg5[%c0_21, %c0_22, %c0_23] : memref<1x1x256xf32, #tpu.memory_space<vmem>>, vector<1x1x256xf32>
      tpu.vector_store %arg5[%c0_21, %c0_22, %c0_23], %31 {strides = array<i32>} : memref<1x1x256xf32, #tpu.memory_space<vmem>>, vector<1x1x256xf32>,
    } else {
    }
    %c0 = arith.constant 0 : index
    %c0_1 = arith.constant 0 : index
    %c0_2 = arith.constant 0 : index
    %3 = vector.load %arg2[%c0, %c0_1, %c0_2] : memref<1x4x256xf32, #tpu.memory_space<vmem>>, vector<1x4x256xf32>
    %cst = arith.constant dense<0xFF800000> : vector<1x256xf32>
    %4 = vector.multi_reduction <maximumf>, %3, %cst [1] : vector<1x4x256xf32> to vector<1x256xf32>
    %5 = vector.shape_cast %4 : vector<1x256xf32> to vector<1x1x256xf32>
    %6 = vector.broadcast %5 : vector<1x1x256xf32> to vector<1x4x256xf32>
    %7 = arith.subf %3, %6 : vector<1x4x256xf32>
    %8 = math.exp %7 : vector<1x4x256xf32>
    %cst_3 = arith.constant dense<0.000000e+00> : vector<1x256xf32>
    %9 = vector.multi_reduction <add>, %8, %cst_3 [1] : vector<1x4x256xf32> to vector<1x256xf32>
    %10 = vector.shape_cast %9 : vector<1x256xf32> to vector<1x1x256xf32>
    %11 = math.log %10 : vector<1x1x256xf32>
    %12 = arith.addf %5, %11 : vector<1x1x256xf32>
    %c0_4 = arith.constant 0 : index
    %c0_5 = arith.constant 0 : index
    %c0_6 = arith.constant 0 : index
    %13 = vector.load %arg3[%c0_4, %c0_5, %c0_6] : memref<1x1x256xi32, #tpu.memory_space<vmem>>, vector<1x1x256xi32>
    %14 = tpu.iota {dimensions = array<i32: 1>} : vector<1x4x256xi32>
    %15 = vector.broadcast %13 : vector<1x1x256xi32> to vector<1x4x256xi32>
    %16 = arith.cmpi eq, %14, %15 : vector<1x4x256xi32>
    %cst_7 = arith.constant 0.000000e+00 : f32
    %17 = vector.broadcast %cst_7 : f32 to vector<1x4x256xf32>
    %18 = arith.select %16, %3, %17 : vector<1x4x256xi1>, vector<1x4x256xf32>
    %cst_8 = arith.constant dense<0.000000e+00> : vector<1x256xf32>
    %19 = vector.multi_reduction <add>, %18, %cst_8 [1] : vector<1x4x256xf32> to vector<1x256xf32>
    %20 = vector.shape_cast %19 : vector<1x256xf32> to vector<1x1x256xf32>
    %21 = arith.subf %12, %20 : vector<1x1x256xf32>
    %cst_9 = arith.constant 0.000000e+00 : f32
    %cst_10 = arith.constant 27.6310215 : f32
    %22 = vector.broadcast %cst_9 : f32 to vector<1x1x256xf32>
    %23 = arith.maximumf %22, %21 : vector<1x1x256xf32>
    %24 = vector.broadcast %cst_10 : f32 to vector<1x1x256xf32>
    %25 = arith.minimumf %24, %23 : vector<1x1x256xf32>
    %c0_11 = arith.constant 0 : index
    %c0_12 = arith.constant 0 : index
    %c0_13 = arith.constant 0 : index
    %26 = vector.load %arg5[%c0_11, %c0_12, %c0_13] : memref<1x1x256xf32, #tpu.memory_space<vmem>>, vector<1x1x256xf32>
    %c0_14 = arith.constant 0 : index
    %c0_15 = arith.constant 0 : index
    %c0_16 = arith.constant 0 : index
    %27 = vector.load %arg4[%c0_14, %c0_15, %c0_16] : memref<1x1x256xf32, #tpu.memory_space<vmem>>, vector<1x1x256xf32>
    %28 = arith.mulf %25, %27 : vector<1x1x256xf32>
    %29 = arith.addf %26, %28 : vector<1x1x256xf32>
    %c0_17 = arith.constant 0 : index
    %c0_18 = arith.constant 0 : index
    %c0_19 = arith.constant 0 : index
    %30 = vector.load %arg5[%c0_17, %c0_18, %c0_19] : memref<1x1x256xf32, #tpu.memory_space<vmem>>, vector<1x1x256xf32>
    tpu.vector_store %arg5[%c0_17, %c0_18, %c0_19], %29 {strides = array<i32>} : memref<1x1x256xf32, #tpu.memory_space<vmem>>, vector<1x1x256xf32>,
    return
  }
  func.func @transform_0(%arg0: i32, %arg1: i32) -> (i32, i32, i32) {
    %c0_i32 = arith.constant 0 : i32
    %c0_i32_0 = arith.constant 0 : i32
    return %arg0, %c0_i32, %arg1 : i32, i32, i32
  }
  func.func @transform_1(%arg0: i32, %arg1: i32) -> (i32, i32, i32) {
    %c0_i32 = arith.constant 0 : i32
    %c0_i32_0 = arith.constant 0 : i32
    return %arg0, %c0_i32, %arg1 : i32, i32, i32
  }
  func.func @transform_2(%arg0: i32, %arg1: i32) -> (i32, i32, i32) {
    %c0_i32 = arith.constant 0 : i32
    %c0_i32_0 = arith.constant 0 : i32
    return %arg0, %c0_i32, %arg1 : i32, i32, i32
  }
  func.func @transform_3(%arg0: i32, %arg1: i32) -> (i32, i32, i32) {
    %c0_i32 = arith.constant 0 : i32
    %c0_i32_0 = arith.constant 0 : i32
    %c0_i32_1 = arith.constant 0 : i32
    return %arg0, %c0_i32, %c0_i32_0 : i32, i32, i32
  }
}

</mosaic_0001>

<bundles_post_ra>
// kernel: cross_entropy_pallas.1
= control target key start
LH: loop header
LB: loop body
LE: loop exit
PB: predicated region body
PF: predicated region fallthrough
CT: control target
= control target key end

     0   :  { %s584_s12 = smov 0   ;;  %s586_s13 = smov 0   ;;  %s654_s0 = inlined_call_operand.vmem [shape: f32[2,4,256], index: 0, kind: input, shape index: {}]   ;;  %s655_s1 = inlined_call_operand.vmem [shape: s32[2,1,256], index: 1, kind: input, shape index: {}]   ;;  %s656_s2 = inlined_call_operand.vmem [shape: f32[2,1,256], index: 2, kind: input, shape index: {}]   ;;  %s657_s3 = inlined_call_operand.vmem [shape: f32[2,1,256], index: 3, kind: output, shape index: {}]  }
   0x1   :  { %s588_s14 = smov 0  }
   0x2 LB: > { %s25_s15 = sadd.s32 1, %s556_s13  ;;  %p496_p0 = scmp.ge.s32.totalorder %s560_s14, 1  ;;  %s560_s14 = sphi %s588_s14, %s13_s14   ;;  %s556_s13 = sphi %s586_s13, %s661_s13   ;;  %s552_s12 = sphi %s584_s12, %s660_s12  }
   0x3   : > { %p27_p1 = scmp.ge.s32.totalorder %s25_s15, 2  ;;  %p188_p2 = scmp.lt.s32.totalorder %s560_s14, 3 }
   0x5   : > { %s663_s15 = smov (%p27_p1, %s25_s15), 0  ;;  %p189_p3 = pnand %p496_p0, %p188_p2 }
   0x6   : > { %p232_p4 = scmp.lt.s32.totalorder (!%p189_p3), %s552_s12, 1  ;;  %v267_v0 = vlaneseq (!%p189_p3)  ;;  %vm276_vm1 = vcmask (!%p189_p3), 1043456   ;;  %v562_v3 = vmov (!%p189_p3), 0.0  }
   0x7   : > { %192 = sbr.rel (%p189_p3) target bundleno = 97 (0x61), region = 32 }
   0x8   : > { %vm602_vm0 = vcmp.lt.s32.totalorder (!%p189_p3), %v267_v0, 256  ;;  %v622_v20 = vshrl.u32 (!%p189_p3), %v267_v0, 7 }
   0xa   : > { %v326_v23 = vsub.s32 (!%p189_p3), 0, %v622_v20  ;;  %v330_v25 = vsub.s32 (!%p189_p3), 1, %v622_v20 }
   0xe   : > { %s665_s12 = smov (!%p232_p4, %s552_s12), 1 }
   0xf   : > { %s504_s16 = sshll.u32 %s665_s12, 3  ;;  %s609_s20 = sshll.u32 %s665_s12, 1 }
  0x10   : > { %s239_s19 = scalar_lea.vmem %s654_s0, %s504_s16  ;;  %s615_s23 = scalar_lea.vmem %s657_s3, %s609_s20 }
  0x11   : > { %v272_v2 = vld [vmem:[%s239_s19] sm:$0xff]  ;;  %271 = vst.msk [vmem:[%s615_s23] sm:$0x3] %vm602_vm0, %v562_v3  ;;  %s248_s26 = scalar_lea.vmem %s655_s1, %s609_s20  ;;  %s257_s29 = scalar_lea.vmem %s656_s2, %s609_s20 }
  0x12   : > { %v274_v4 = vcombine.high %v272_v2, %v272_v2  ;;  %v277_v5 = vsel %vm276_vm1, %v272_v2, -inf  ;;  %v321_v24 = vld [vmem:[%s248_s26] sm:$0x3] }
  0x13   : > { %v278_v6 = vrot.slane %v277_v5, 4  ;;  %v327_v26 = vrot.slane %v321_v24, %v326_v23  ;;  %v331_v27 = vrot.slane %v321_v24, %v330_v25 }
  0x14   : > { %v284_v7 = vsel %vm276_vm1, %v274_v4, -inf }
  0x15   : > { %v279_v8 = vmax.f32 %v277_v5, %v278_v6  ;;  %v285_v9 = vrot.slane %v284_v7, 4  ;;  %vm332_vm2 = vcmp.eq.s32.totalorder %v622_v20, %v327_v26  ;;  %vm333_vm3 = vcmp.eq.s32.totalorder %v622_v20, %v331_v27 }
  0x16   : > { %v334_v28 = vsel %vm332_vm2, %v272_v2, 0.0  ;;  %v335_v32 = vsel %vm333_vm3, %v274_v4, 0.0  ;;  %v563_v5 = vmov 1966171168  }
  0x17   : > { %v280_v10 = vrot.slane %v279_v8, 2  ;;  %v286_v11 = vmax.f32 %v284_v7, %v285_v9  ;;  %v336_v34 = vsel %vm276_vm1, %v334_v28, 0.0  ;;  %v343_v38 = vsel %vm276_vm1, %v335_v32, 0.0 }
  0x18   : > { %v337_v39 = vrot.slane %v336_v34, 4  ;;  %v344_v42 = vrot.slane %v343_v38, 4  ;;  %v375_v6 = vunpack.c.l.s4 %v563_v5 }
  0x19   : > { %v281_v12 = vmax.f32 %v279_v8, %v280_v10  ;;  %v287_v13 = vrot.slane %v286_v11, 2 }
  0x1a   : > { %v338_v45 = vadd.f32 %v337_v39, %v336_v34  ;;  %v345_v48 = vadd.f32 %v344_v42, %v343_v38 }
  0x1b   : > { %v282_v14 = vrot.slane %v281_v12, 1  ;;  %v288_v15 = vmax.f32 %v286_v11, %v287_v13  ;;  %v376_v13 = vunpack.c.0.s8 %v375_v6 }
  0x1c   : > { %v339_v51 = vrot.slane %v338_v45, 2  ;;  %v346_v53 = vrot.slane %v345_v48, 2 }
  0x1d   : > { %v283_v16 = vmax.f32 %v281_v12, %v282_v14  ;;  %v289_v17 = vrot.slane %v288_v15, 1 }
  0x1e   : > { %v340_v54 = vadd.f32 %v339_v51, %v338_v45  ;;  %v347_v55 = vadd.f32 %v346_v53, %v345_v48 }
  0x1f   : > { %v290_v18 = vmax.f32 %v288_v15, %v289_v17 }
  0x20   : > { %v341_v56 = vrot.slane %v340_v54, 1  ;;  %v348_v57 = vrot.slane %v347_v55, 1 }
  0x21   : > { %v293_v19 = vcombine.low %v283_v16, %v290_v18 }
  0x22   : > { %v342_v60 = vadd.f32 %v341_v56, %v340_v54  ;;  %v349_v0 = vadd.f32 %v348_v57, %v347_v55 }
  0x23   : > { %v295_v21 = vsub.f32 %v272_v2, %v293_v19  ;;  %v357_v2 = vld [vmem:[%s257_s29] sm:$0x3] }
  0x24   : > { %v362_v9 = vrot.slane %v357_v2, %v326_v23  ;;  %v366_v12 = vrot.slane %v357_v2, %v330_v25 }
  0x25   : > { %v296_v22 = vmul.f32 1.442695, %v295_v21 }
  0x27   : > { %532 = vpow2.f32 %v296_v22 }
  0x31   : > { %v533_v29 = vpop.eup %532 }
  0x32   : > { %v299_v30 = vcombine.high %v533_v29, %v533_v29  ;;  %v301_v31 = vsel %vm276_vm1, %v533_v29, 0.0 }
  0x33   : > { %v302_v33 = vrot.slane %v301_v31, 4 }
  0x34   : > { %v308_v35 = vsel %vm276_vm1, %v299_v30, 0.0 }
  0x35   : > { %v303_v36 = vadd.f32 %v302_v33, %v301_v31  ;;  %v309_v37 = vrot.slane %v308_v35, 4 }
  0x37   : > { %v304_v40 = vrot.slane %v303_v36, 2  ;;  %v310_v41 = vadd.f32 %v309_v37, %v308_v35 }
  0x39   : > { %v305_v43 = vadd.f32 %v304_v40, %v303_v36  ;;  %v311_v44 = vrot.slane %v310_v41, 2 }
  0x3b   : > { %v306_v46 = vrot.slane %v305_v43, 1  ;;  %v312_v47 = vadd.f32 %v311_v44, %v310_v41 }
  0x3d   : > { %v307_v49 = vadd.f32 %v306_v46, %v305_v43  ;;  %v313_v50 = vrot.slane %v312_v47, 1 }
  0x3f   : > { %v314_v52 = vadd.f32 %v313_v50, %v312_v47  ;;  %534 = vlog2.f32 %v307_v49 }
  0x41   : > { %536 = vlog2.f32 %v314_v52 }
  0x49   : > { %v535_v58 = vpop.eup %534 }
  0x4a   : > { %v316_v59 = vmul.f32 0.6931472, %v535_v58 }
  0x4b   : > { %v537_v61 = vpop.eup %536 }
  0x4c   : > { %v318_v62 = vmul.f32 0.6931472, %v537_v61  ;;  %v319_v63 = vadd.f32 %v316_v59, %v283_v16  ;;  %v379_v16 = vsub.s32 %v376_v13, %v622_v20 }
  0x4e   : > { %v320_v3 = vadd.f32 %v318_v62, %v290_v18  ;;  %v350_v4 = vsub.f32 %v319_v63, %v342_v60  ;;  %v356_v18 = vld [vmem:[%s615_s23] sm:$0x3] }
  0x50   : > { %v351_v7 = vsub.f32 %v320_v3, %v349_v0  ;;  %v352_v8 = vmax.f32 %v350_v4, 0.0 }
  0x52   : > { %v353_v10 = vmax.f32 %v351_v7, 0.0  ;;  %v354_v11 = vmin.f32 %v352_v8, 27.631021 }
  0x54   : > { %v355_v14 = vmin.f32 %v353_v10, 27.631021  ;;  %v369_v15 = vmul.f32 %v362_v9, %v354_v11 }
  0x56   : > { %v370_v17 = vmul.f32 %v366_v12, %v355_v14 }
  0x58   : > { %v373_v19 = vcombine.low %v369_v15, %v370_v17 }
  0x5a   : > { %v380_v21 = vrot.slane %v373_v19, %v379_v16 }
  0x5c   : > { %v387_v22 = vrot.slane %v380_v21, %v379_v16 }
  0x5e   : > { %v389_v24 = vadd.f32 %v387_v22, %v356_v18 }
  0x60   : > { %394 = vst.msk [vmem:[%s615_s23] sm:$0x3] %vm602_vm0, %v389_v24 }
  0x61 PF: > { %s13_s14 = sadd.s32 1, %s560_s14   ;;  %s660_s12 = smov %s556_s13 }
  0x62   : > { %p10_p5 = scmp.ge.s32.totalorder %s13_s14, 4   ;;  %s661_s13 = smov %s663_s15 }
  0x64   :  { %12 = sbr.rel (!%p10_p5) target bundleno = 2 (0x2), region = 72 }

</bundles_post_ra>
